<compile_context>
chip_gen: v7x
topology: tpu7x:2x2x1
jax: 0.10.0
libtpu: 0.0.40
codegen_flags: <defaults>
</compile_context>

<pallas_src>
import jax
import jax.numpy as jnp
from jax.experimental import pallas as pl
from jax.experimental.pallas import tpu as pltpu

LANE = 128   # vreg lane width
SUB = 8      # vreg sublane count (f32)


def _linear_kernel(params_ref, x_ref, o_ref):
    # params_ref: SMEM f32[4] = [w0, w1, b0, b1]
    # x_ref:      VMEM f32[tile_rows, 128]   (lane-dense batch slab)
    # o_ref:      VMEM f32[2, tile_rows, 128] (feature-major, lane-dense)
    x = x_ref[...]
    w0 = params_ref[0]
    w1 = params_ref[1]
    b0 = params_ref[2]
    b1 = params_ref[3]
    # Pure VPU fused multiply-add; no MXU involvement.
    o_ref[0] = x * w0 + b0
    o_ref[1] = x * w1 + b1


def q_forward(x, weight, bias, *, tile_rows=512):
    """x: (B, 1) f32; weight: (2, 1) f32 (PyTorch layout); bias: (2,) f32."""
    B = x.shape[0]
    dtype = x.dtype

    # ---- lane-dense repack of the batch: (B,) -> (rows_pad, 128) ----
    rows = -(-B // LANE)                       # ceil(B / 128)
    rows8 = -(-rows // SUB) * SUB              # round up to sublane multiple
    tile_rows = min(tile_rows, rows8)          # tile_rows stays a multiple of 8
    rows_pad = -(-rows8 // tile_rows) * tile_rows
    n_pad = rows_pad * LANE - B

    x_flat = x.reshape(-1)
    x_slab = jnp.pad(x_flat, (0, n_pad)).reshape(rows_pad, LANE)

    # Packed scalar params for SMEM: [w0, w1, b0, b1]
    params = jnp.concatenate(
        [weight.reshape(-1).astype(dtype), bias.reshape(-1).astype(dtype)]
    )

    grid = (rows_pad // tile_rows,)

    out_slab = pl.pallas_call(
        _linear_kernel,
        out_shape=jax.ShapeDtypeStruct((2, rows_pad, LANE), dtype),
        grid=grid,
        in_specs=[
            # whole (4,) params array pinned in SMEM (scalar reads in-kernel)
            pl.BlockSpec(memory_space=pltpu.MemorySpace.SMEM),
            # lane-dense input tile
            pl.BlockSpec((tile_rows, LANE), lambda i: (i, 0)),
        ],
        # feature-major, lane-dense output tile (unmasked full-lane stores)
        out_specs=pl.BlockSpec((2, tile_rows, LANE), lambda i: (0, i, 0)),
        compiler_params=pltpu.CompilerParams(
            dimension_semantics=("parallel",),
            vmem_limit_bytes=32 * 1024 * 1024,
        ),
        cost_estimate=pl.CostEstimate(
            flops=4 * B,            # 2 mul + 2 add per element
            transcendentals=0,
            bytes_accessed=12 * B,  # 4 B read + 8 B write per element
        ),
    )(params, x_slab)

    # (2, rows_pad, 128) -> (2, rows_pad*128) -> strip padding -> (B, 2)
    y = out_slab.reshape(2, rows_pad * LANE)[:, :B].T
    return y


if __name__ == "__main__":
    key = jax.random.PRNGKey(0)
    kx, kw, kb = jax.random.split(key, 3)

    # Deterministic synthetic params mimicking nn.Linear(1, 2):
    # PyTorch default init is U(-1/sqrt(in), 1/sqrt(in)) with in_features=1.
    weight = jax.random.uniform(kw, (2, 1), jnp.float32, minval=-1.0, maxval=1.0)
    bias = jax.random.uniform(kb, (2,), jnp.float32, minval=-1.0, maxval=1.0)

    # Small example input: batch of 8 scalars, shape (8, 1) as the module expects.
    x = jax.random.normal(kx, (8, 1), jnp.float32)

    out = q_forward(x, weight, bias)
    out = jax.block_until_ready(out)

    # Sanity check against plain-JAX reference (x @ W.T + b).
    ref = x @ weight.T + bias
    assert out.shape == (8, 2)
    assert jnp.allclose(out, ref, atol=1e-5), "mismatch vs reference"

    print("KERNEL_OK")
</pallas_src>

<mosaic_0001>
module attributes {stable_mosaic.version = 11 : i64} {
  func.func @_linear_kernel(%arg0: i32, %arg1: memref<4xf32, #tpu.memory_space<smem>>, %arg2: memref<8x128xf32, #tpu.memory_space<vmem>>, %arg3: memref<2x8x128xf32, #tpu.memory_space<vmem>>) attributes {dimension_semantics = [#tpu.dimension_semantics<parallel>], iteration_bounds = array<i64: 1>, scalar_prefetch = 0 : i64, scratch_operands = 0 : i64, tpu.core_type = #tpu.core_type<tc>, window_params = [{transform_indices = @transform_0, window_bounds = array<i64: 4>}, {transform_indices = @transform_1, window_bounds = array<i64: 8, 128>}, {transform_indices = @transform_2, window_bounds = array<i64: 2, 8, 128>}]} {
    %c0 = arith.constant 0 : index
    %c0_0 = arith.constant 0 : index
    %0 = vector.load %arg2[%c0, %c0_0] : memref<8x128xf32, #tpu.memory_space<vmem>>, vector<8x128xf32>
    %c0_1 = arith.constant 0 : index
    %1 = memref.load %arg1[%c0_1] : memref<4xf32, #tpu.memory_space<smem>>
    %c1 = arith.constant 1 : index
    %2 = memref.load %arg1[%c1] : memref<4xf32, #tpu.memory_space<smem>>
    %c2 = arith.constant 2 : index
    %3 = memref.load %arg1[%c2] : memref<4xf32, #tpu.memory_space<smem>>
    %c3 = arith.constant 3 : index
    %4 = memref.load %arg1[%c3] : memref<4xf32, #tpu.memory_space<smem>>
    %5 = vector.broadcast %1 : f32 to vector<8x128xf32>
    %6 = arith.mulf %0, %5 : vector<8x128xf32>
    %7 = vector.broadcast %3 : f32 to vector<8x128xf32>
    %8 = arith.addf %6, %7 : vector<8x128xf32>
    %c0_2 = arith.constant 0 : index
    %c0_3 = arith.constant 0 : index
    %c0_4 = arith.constant 0 : index
    %9 = vector.load %arg3[%c0_2, %c0_3, %c0_4] : memref<2x8x128xf32, #tpu.memory_space<vmem>>, vector<1x8x128xf32>
    %10 = vector.shape_cast %9 : vector<1x8x128xf32> to vector<8x128xf32>
    %11 = vector.shape_cast %8 : vector<8x128xf32> to vector<1x8x128xf32>
    tpu.vector_store %arg3[%c0_2, %c0_3, %c0_4], %11 {strides = array<i32>} : memref<2x8x128xf32, #tpu.memory_space<vmem>>, vector<1x8x128xf32>,
    %12 = vector.broadcast %2 : f32 to vector<8x128xf32>
    %13 = arith.mulf %0, %12 : vector<8x128xf32>
    %14 = vector.broadcast %4 : f32 to vector<8x128xf32>
    %15 = arith.addf %13, %14 : vector<8x128xf32>
    %c1_5 = arith.constant 1 : index
    %c0_6 = arith.constant 0 : index
    %c0_7 = arith.constant 0 : index
    %16 = vector.load %arg3[%c1_5, %c0_6, %c0_7] : memref<2x8x128xf32, #tpu.memory_space<vmem>>, vector<1x8x128xf32>
    %17 = vector.shape_cast %16 : vector<1x8x128xf32> to vector<8x128xf32>
    %18 = vector.shape_cast %15 : vector<8x128xf32> to vector<1x8x128xf32>
    tpu.vector_store %arg3[%c1_5, %c0_6, %c0_7], %18 {strides = array<i32>} : memref<2x8x128xf32, #tpu.memory_space<vmem>>, vector<1x8x128xf32>,
    return
  }
  func.func @transform_0(%arg0: i32) -> i32 {
    %c0_i32 = arith.constant 0 : i32
    %c0_i32_0 = arith.constant 0 : i32
    return %c0_i32 : i32
  }
  func.func @transform_1(%arg0: i32) -> (i32, i32) {
    %c0_i32 = arith.constant 0 : i32
    %c0_i32_0 = arith.constant 0 : i32
    return %arg0, %c0_i32 : i32, i32
  }
  func.func @transform_2(%arg0: i32) -> (i32, i32, i32) {
    %c0_i32 = arith.constant 0 : i32
    %c0_i32_0 = arith.constant 0 : i32
    %c0_i32_1 = arith.constant 0 : i32
    return %c0_i32, %arg0, %c0_i32_0 : i32, i32, i32
  }
}

</mosaic_0001>

<bundles_post_ra>
// kernel: tpu_custom_call.1
= control target key start
LH: loop header
LB: loop body
LE: loop exit
PB: predicated region body
PF: predicated region fallthrough
CT: control target
= control target key end

     0   :  { %7 = vsyncpa [#allocation5], 0  ;;  %s193_s0 = inlined_call_operand.hbm [shape: f32[4], index: 0, kind: input, shape index: {}]   ;;  %s194_s1 = inlined_call_operand.hbm [shape: f32[8,128], index: 1, kind: input, shape index: {}]   ;;  %s195_s2 = inlined_call_operand.hbm [shape: f32[2,8,128], index: 2, kind: output, shape index: {}]  }
   0x1   :  { %8 = vsyncpa [#allocation3], 0 }
   0x2   :  { %9 = vsyncpa [#allocation4], 0  ;;  %s77_s11 = scalar_lea.hbm %s193_s0, 16 }
   0x3   :  { %p78_p0 = scmp.ne.s32.totalorder %s193_s0, %s77_s11  ;;  %p81_p1 = scmp.lt.u32.totalorder %s77_s11, %s193_s0 }
   0x5   :  { %p83_p2 = pnand %p81_p1, %p78_p0 }
   0x7   :  { %86 = shalt.err (!%p83_p2)
}
   0x8   :  { %s137_s16 = smov [#allocation2]   ;;  %s138_s19 = smov [#allocation6]  }
   0x9   :  { %17 = dma.hbm_to_smem %s193_s0, 16, %s137_s16, [#allocation5]  }
   0xa   :  { %s24_s20 = sshll.u32 %s138_s19, 4  ;;  %s87_s23 = scalar_lea.hbm %s194_s1, 128  ;;  %s25_s20 = int_to_ptr.vmem [resolvable:$true] %s24_s20 }
   0xb   :  { %p88_p3 = scmp.ne.s32.totalorder %s194_s1, %s87_s23  ;;  %p91_p4 = scmp.lt.u32.totalorder %s87_s23, %s194_s1 }
   0xd   :  { %p93_p5 = pnand %p91_p4, %p88_p3 }
   0xf   :  { %96 = shalt.err (!%p93_p5)
}
  0x10   :  { %s97_s28 = scalar_lea.vmem %s25_s20, 128  ;;  %p102_p7 = scmp.lt.s32.totalorder %s25_s20, %s25_s20 }
  0x11   :  { %p98_p6 = scmp.ne.s32.totalorder %s25_s20, %s97_s28  ;;  %p103_p8 = scmp.lt.s32.totalorder %s97_s28, %s97_s28 }
  0x13   :  { %p104_p9 = por %p103_p8, %p102_p7 }
  0x15   :  { %p105_p10 = pnand %p104_p9, %p98_p6 }
  0x17   :  { %108 = shalt.err (!%p105_p10)
}
  0x18   :  { %27 = dma.hbm_to_vmem [thread:$0]  %s194_s1, 128, %s25_s20, [#allocation3]  }
  0x19   :  { %131 = dma.done.wait [#allocation5], 16  }
  0x1a   :  { %132 = vsyncadd [#allocation5], 4294967280 }
  0x1b   :  { %133 = dma.done.wait [#allocation3], 128  }
  0x1c   :  { %134 = vsyncadd [#allocation3], 4294967168 }
  0x1d   :  { %34 = sfence }
  0x1e   :  { %s36_s30 = sld [smem:[#allocation2]]  ;;  %s70_s3 = sld [smem:[#allocation2 + $0x2]]  ;;  %v35_v0 = vld [vmem:[#allocation6] sm:$0xff] }
  0x1f   :  { %s69_s4 = sld [smem:[#allocation2 + $0x1]]  ;;  %s71_s5 = sld [smem:[#allocation2 + $0x3]] }
  0x20   :  { %s139_s6 = smov [#allocation7]  }
  0x21   :  { %s56_s7 = sshll.u32 %s139_s6, 4  ;;  %s57_s7 = int_to_ptr.vmem [resolvable:$true] %s56_s7 }
  0x22   :  { %s109_s1 = scalar_lea.vmem %s57_s7, 256  ;;  %p114_p12 = scmp.lt.s32.totalorder %s57_s7, %s57_s7 }
  0x23   :  { %p110_p11 = scmp.ne.s32.totalorder %s57_s7, %s109_s1  ;;  %p115_p13 = scmp.lt.s32.totalorder %s109_s1, %s109_s1 }
  0x24   :  { %v40_v1 = vstv %s36_s30  ;;  %v42_v2 = vstv %s70_s3 }
  0x25   :  { %v41_v3 = vmul.f32 %v40_v1, %v35_v0  ;;  %v45_v4 = vstv %s69_s4  ;;  %v47_v5 = vstv %s71_s5  ;;  %p116_p0 = por %p115_p13, %p114_p12 }
  0x26   :  { %v46_v6 = vmul.f32 %v45_v4, %v35_v0 }
  0x27   :  { %v43_v7 = vadd.f32 %v42_v2, %v41_v3  ;;  %p117_p1 = pnand %p116_p0, %p110_p11 }
  0x28   :  { %v48_v8 = vadd.f32 %v47_v5, %v46_v6 }
  0x29   :  { %44 = vst [vmem:[#allocation7] sm:$0xff] %v43_v7 }
  0x2a   :  { %50 = vst [vmem:[#allocation7 + $0x8] sm:$0xff] %v48_v8 }
  0x2b   :  { %120 = shalt.err (!%p117_p1)
}
  0x2c   :  { %s121_s10 = scalar_lea.hbm %s195_s2, 256 }
  0x2d   :  { %p122_p2 = scmp.ne.s32.totalorder %s195_s2, %s121_s10  ;;  %p125_p3 = scmp.lt.u32.totalorder %s121_s10, %s195_s2 }
  0x2f   :  { %p127_p4 = pnand %p125_p3, %p122_p2 }
  0x31   :  { %130 = shalt.err (!%p127_p4)
}
  0x32   :  { %s140_s15 = smov 128   ;;  %s141_s16 = smov 8  }
  0x33   :  { %62 = dma.vmem_to_hbm [thread:$0]  %s57_s7, 256, %s195_s2, [#allocation4], %s140_s15, %s140_s15, %s141_s16  }
  0x34   :  { %135 = dma.done.wait [#allocation4], 256  }
  0x35   :  { %136 = vsyncadd [#allocation4], 4294967040 }
  0x36   :  { %66 = vsyncpa [#allocation3], 1 }
  0x37   :  { %67 = vsyncpa [#allocation4], 1 }
  0x38   :  { %68 = vsyncpa [#allocation5], 1 }

</bundles_post_ra>
